<compile_context>
chip_gen: v7x
topology: tpu7x:2x2x1
jax: 0.10.0
libtpu: 0.0.40
codegen_flags: <defaults>
</compile_context>

<pallas_src>
import math
import functools

import jax
import jax.numpy as jnp
from jax.experimental import pallas as pl
from jax.experimental.pallas import tpu as pltpu


def _mha_kernel(xq_ref, xk_ref, xv_ref, addmask_ref,
                wq_ref, bq_ref, wk_ref, bk_ref, wv_ref, bv_ref,
                wo_ref, bo_ref, out_ref,
                *, S: int, n_heads: int, d_k: int):
    D = n_heads * d_k

    # Linear projections (bf16 operands, f32 accumulation on the MXU).
    # Weights are pre-transposed to (in, out) on the host; 1/sqrt(d_k) is folded
    # into wq/bq, so no in-kernel scale multiply.
    q = jnp.dot(xq_ref[...], wq_ref[...], preferred_element_type=jnp.float32) + bq_ref[...]
    k = jnp.dot(xk_ref[...], wk_ref[...], preferred_element_type=jnp.float32) + bk_ref[...]
    v = jnp.dot(xv_ref[...], wv_ref[...], preferred_element_type=jnp.float32) + bv_ref[...]

    # Head split: single reshape + minor-dim transpose (no per-head slicing / stacking).
    qh = jnp.transpose(q.reshape(S, n_heads, d_k), (1, 0, 2)).astype(jnp.bfloat16)
    kh = jnp.transpose(k.reshape(S, n_heads, d_k), (1, 0, 2)).astype(jnp.bfloat16)
    vh = jnp.transpose(v.reshape(S, n_heads, d_k), (1, 0, 2)).astype(jnp.bfloat16)

    # Scores (already scaled via W_q) + additive mask (0 keep / -1e9 masked) in f32.
    scores = jnp.einsum("hqd,hkd->hqk", qh, kh,
                        preferred_element_type=jnp.float32)          # (H, S, S)
    scores = scores + addmask_ref[...][None, :, :]

    # Numerically-safe softmax over keys, kept in f32; reciprocal on the EUP.
    m = jnp.max(scores, axis=-1, keepdims=True)
    e = jnp.exp(scores - m)
    denom = jnp.sum(e, axis=-1, keepdims=True)
    p = e * pl.reciprocal(denom, approx=True)
    # (dropout with p=0 -> identity)

    ctx = jnp.einsum("hqk,hkd->hqd", p.astype(jnp.bfloat16), vh,
                     preferred_element_type=jnp.float32)             # (H, S, d_k)

    # Merge heads back to (S, D) and do ONE output matmul against W_o^T.
    ctx2 = jnp.transpose(ctx, (1, 0, 2)).reshape(S, D).astype(jnp.bfloat16)
    out = jnp.dot(ctx2, wo_ref[...], preferred_element_type=jnp.float32) + bo_ref[...]
    out_ref[...] = out.astype(out_ref.dtype)


def multi_head_attention(query, key, value, mask, params, *, n_heads: int):
    """query/key/value: (B, S, D) float32. mask: (S, S) float32 (1=keep, 0=mask)."""
    B, S, D = query.shape
    assert D % n_heads == 0
    d_k = D // n_heads

    wq, bq, wk, bk, wv, bv, wo, bo = params  # W: (out, in) like nn.Linear, b: (1, D)

    # Host-side (one-time / XLA-fused) layout & dtype prep.
    scale = 1.0 / math.sqrt(d_k)
    wq_t = (wq.T * scale).astype(jnp.bfloat16)        # scale folded into W_q
    bq_s = (bq * scale).astype(jnp.float32)           # ... and into b_q
    wk_t = wk.T.astype(jnp.bfloat16)
    wv_t = wv.T.astype(jnp.bfloat16)
    wo_t = wo.T.astype(jnp.bfloat16)                  # single (D, D) W_o^T, not tiled
    add_mask = jnp.where(mask == 0.0, jnp.float32(-1e9), jnp.float32(0.0))  # (S, S)

    # Lane-dense 2-D layout; per-batch blocks of S rows.
    xq = query.reshape(B * S, D).astype(jnp.bfloat16)
    xk = key.reshape(B * S, D).astype(jnp.bfloat16)
    xv = value.reshape(B * S, D).astype(jnp.bfloat16)

    kernel = functools.partial(_mha_kernel, S=S, n_heads=n_heads, d_k=d_k)

    row_map = lambda i: (i, 0)     # per-batch block
    fix_map = lambda i: (0, 0)     # replicated (weights / biases / mask)

    out2d = pl.pallas_call(
        kernel,
        out_shape=jax.ShapeDtypeStruct((B * S, D), query.dtype),
        grid_spec=pltpu.PrefetchScalarGridSpec(
            num_scalar_prefetch=0,
            grid=(B,),
            in_specs=[
                pl.BlockSpec((S, D), row_map),   # xq
                pl.BlockSpec((S, D), row_map),   # xk
                pl.BlockSpec((S, D), row_map),   # xv
                pl.BlockSpec((S, S), fix_map),   # additive mask
                pl.BlockSpec((D, D), fix_map),   # w_q^T (pre-scaled)
                pl.BlockSpec((1, D), fix_map),   # b_q   (pre-scaled)
                pl.BlockSpec((D, D), fix_map),   # w_k^T
                pl.BlockSpec((1, D), fix_map),   # b_k
                pl.BlockSpec((D, D), fix_map),   # w_v^T
                pl.BlockSpec((1, D), fix_map),   # b_v
                pl.BlockSpec((D, D), fix_map),   # w_o^T
                pl.BlockSpec((1, D), fix_map),   # b_o
            ],
            out_specs=pl.BlockSpec((S, D), row_map),   # lane-dense 2-D output slab
        ),
        compiler_params=pltpu.CompilerParams(dimension_semantics=("parallel",)),
    )(xq, xk, xv, add_mask, wq_t, bq_s, wk_t, bk, wv_t, bv, wo_t, bo)

    return out2d.reshape(B, S, D)


def reference_mha(query, key, value, mask, params, *, n_heads: int):
    """Pure-JAX f32 reference mirroring the PyTorch module (eval mode / p=0 dropout)."""
    B, S, D = query.shape
    d_k = D // n_heads
    wq, bq, wk, bk, wv, bv, wo, bo = params
    q = query @ wq.T + bq
    k = key @ wk.T + bk
    v = value @ wv.T + bv
    q = q.reshape(B, S, n_heads, d_k).transpose(0, 2, 1, 3)
    k = k.reshape(B, S, n_heads, d_k).transpose(0, 2, 1, 3)
    v = v.reshape(B, S, n_heads, d_k).transpose(0, 2, 1, 3)
    scores = jnp.einsum("bhqd,bhkd->bhqk", q, k) / math.sqrt(d_k)
    scores = jnp.where(mask[None, None] == 0.0, -1e9, scores)
    attn = jax.nn.softmax(scores, axis=-1)
    ctx = jnp.einsum("bhqk,bhkd->bhqd", attn, v)
    ctx = ctx.transpose(0, 2, 1, 3).reshape(B, S, D)
    return ctx @ wo.T + bo


if __name__ == "__main__":
    # Module config (small, d_model divisible by n_heads).
    d_model = 32
    n_heads = 4
    # dropout_prob = 0.0 (identity)

    B, S = 2, 8

    key0 = jax.random.PRNGKey(0)
    keys = jax.random.split(key0, 12)

    # Deterministic parameter init, PyTorch nn.Linear-style uniform(-1/sqrt(in), 1/sqrt(in)).
    bound = 1.0 / math.sqrt(d_model)
    def u(k, shape):
        return jax.random.uniform(k, shape, jnp.float32, -bound, bound)

    params = (
        u(keys[0], (d_model, d_model)), u(keys[1], (1, d_model)),   # w_q, b_q
        u(keys[2], (d_model, d_model)), u(keys[3], (1, d_model)),   # w_k, b_k
        u(keys[4], (d_model, d_model)), u(keys[5], (1, d_model)),   # w_v, b_v
        u(keys[6], (d_model, d_model)), u(keys[7], (1, d_model)),   # w_o, b_o
    )

    query = jax.random.normal(keys[8], (B, S, d_model), jnp.float32)
    key_ = jax.random.normal(keys[9], (B, S, d_model), jnp.float32)
    value = jax.random.normal(keys[10], (B, S, d_model), jnp.float32)

    # Causal mask (1 = keep, 0 = masked -> -1e9), exercises the masked_fill path.
    mask = jnp.tril(jnp.ones((S, S), jnp.float32))

    out = multi_head_attention(query, key_, value, mask, params, n_heads=n_heads)
    out = jax.block_until_ready(out)

    ref = reference_mha(query, key_, value, mask, params, n_heads=n_heads)
    assert out.shape == (B, S, d_model)
    # Tolerance accounts for bf16 MXU operands and the approximate EUP reciprocal
    # in the softmax denominator (accumulation and softmax math are f32).
    assert jnp.allclose(out, ref, atol=2e-2, rtol=2e-2), "Pallas output mismatch vs reference"

    print("KERNEL_OK")
</pallas_src>

<mosaic_0001>
module attributes {stable_mosaic.version = 11 : i64} {
  func.func @_mha_kernel(%arg0: i32, %arg1: memref<8x32xbf16, #tpu.memory_space<vmem>>, %arg2: memref<8x32xbf16, #tpu.memory_space<vmem>>, %arg3: memref<8x32xbf16, #tpu.memory_space<vmem>>, %arg4: memref<8x8xf32, #tpu.memory_space<vmem>>, %arg5: memref<32x32xbf16, #tpu.memory_space<vmem>>, %arg6: memref<1x32xf32, #tpu.memory_space<vmem>>, %arg7: memref<32x32xbf16, #tpu.memory_space<vmem>>, %arg8: memref<1x32xf32, #tpu.memory_space<vmem>>, %arg9: memref<32x32xbf16, #tpu.memory_space<vmem>>, %arg10: memref<1x32xf32, #tpu.memory_space<vmem>>, %arg11: memref<32x32xbf16, #tpu.memory_space<vmem>>, %arg12: memref<1x32xf32, #tpu.memory_space<vmem>>, %arg13: memref<8x32xf32, #tpu.memory_space<vmem>>) attributes {dimension_semantics = [#tpu.dimension_semantics<parallel>], iteration_bounds = array<i64: 2>, scalar_prefetch = 0 : i64, scratch_operands = 0 : i64, tpu.core_type = #tpu.core_type<tc>, window_params = [{transform_indices = @transform_0, window_bounds = array<i64: 8, 32>}, {transform_indices = @transform_1, window_bounds = array<i64: 8, 32>}, {transform_indices = @transform_2, window_bounds = array<i64: 8, 32>}, {pipeline_mode = #tpu.pipeline_mode<synchronous>, transform_indices = @transform_3, window_bounds = array<i64: 8, 8>}, {pipeline_mode = #tpu.pipeline_mode<synchronous>, transform_indices = @transform_4, window_bounds = array<i64: 32, 32>}, {pipeline_mode = #tpu.pipeline_mode<synchronous>, transform_indices = @transform_5, window_bounds = array<i64: 1, 32>}, {pipeline_mode = #tpu.pipeline_mode<synchronous>, transform_indices = @transform_6, window_bounds = array<i64: 32, 32>}, {pipeline_mode = #tpu.pipeline_mode<synchronous>, transform_indices = @transform_7, window_bounds = array<i64: 1, 32>}, {pipeline_mode = #tpu.pipeline_mode<synchronous>, transform_indices = @transform_8, window_bounds = array<i64: 32, 32>}, {pipeline_mode = #tpu.pipeline_mode<synchronous>, transform_indices = @transform_9, window_bounds = array<i64: 1, 32>}, {pipeline_mode = #tpu.pipeline_mode<synchronous>, transform_indices = @transform_10, window_bounds = array<i64: 32, 32>}, {pipeline_mode = #tpu.pipeline_mode<synchronous>, transform_indices = @transform_11, window_bounds = array<i64: 1, 32>}, {transform_indices = @transform_12, window_bounds = array<i64: 8, 32>}]} {
    %c0 = arith.constant 0 : index
    %c0_0 = arith.constant 0 : index
    %0 = vector.load %arg1[%c0, %c0_0] : memref<8x32xbf16, #tpu.memory_space<vmem>>, vector<8x32xbf16>
    %c0_1 = arith.constant 0 : index
    %c0_2 = arith.constant 0 : index
    %1 = vector.load %arg5[%c0_1, %c0_2] : memref<32x32xbf16, #tpu.memory_space<vmem>>, vector<32x32xbf16>
    %cst = arith.constant dense<0.000000e+00> : vector<8x32xf32>
    %2 = tpu.matmul %0, %1, %cst {dimension_numbers = #tpu.dot_dimension_numbers<[1], [0], [0], [1], [0, 0, 1, 1], [], []>} : vector<8x32xbf16>, vector<32x32xbf16>, vector<8x32xf32> -> vector<8x32xf32>
    %c0_3 = arith.constant 0 : index
    %c0_4 = arith.constant 0 : index
    %3 = vector.load %arg6[%c0_3, %c0_4] : memref<1x32xf32, #tpu.memory_space<vmem>>, vector<1x32xf32>
    %4 = vector.broadcast %3 : vector<1x32xf32> to vector<8x32xf32>
    %5 = arith.addf %2, %4 : vector<8x32xf32>
    %c0_5 = arith.constant 0 : index
    %c0_6 = arith.constant 0 : index
    %6 = vector.load %arg2[%c0_5, %c0_6] : memref<8x32xbf16, #tpu.memory_space<vmem>>, vector<8x32xbf16>
    %c0_7 = arith.constant 0 : index
    %c0_8 = arith.constant 0 : index
    %7 = vector.load %arg7[%c0_7, %c0_8] : memref<32x32xbf16, #tpu.memory_space<vmem>>, vector<32x32xbf16>
    %cst_9 = arith.constant dense<0.000000e+00> : vector<8x32xf32>
    %8 = tpu.matmul %6, %7, %cst_9 {dimension_numbers = #tpu.dot_dimension_numbers<[1], [0], [0], [1], [0, 0, 1, 1], [], []>} : vector<8x32xbf16>, vector<32x32xbf16>, vector<8x32xf32> -> vector<8x32xf32>
    %c0_10 = arith.constant 0 : index
    %c0_11 = arith.constant 0 : index
    %9 = vector.load %arg8[%c0_10, %c0_11] : memref<1x32xf32, #tpu.memory_space<vmem>>, vector<1x32xf32>
    %10 = vector.broadcast %9 : vector<1x32xf32> to vector<8x32xf32>
    %11 = arith.addf %8, %10 : vector<8x32xf32>
    %c0_12 = arith.constant 0 : index
    %c0_13 = arith.constant 0 : index
    %12 = vector.load %arg3[%c0_12, %c0_13] : memref<8x32xbf16, #tpu.memory_space<vmem>>, vector<8x32xbf16>
    %c0_14 = arith.constant 0 : index
    %c0_15 = arith.constant 0 : index
    %13 = vector.load %arg9[%c0_14, %c0_15] : memref<32x32xbf16, #tpu.memory_space<vmem>>, vector<32x32xbf16>
    %cst_16 = arith.constant dense<0.000000e+00> : vector<8x32xf32>
    %14 = tpu.matmul %12, %13, %cst_16 {dimension_numbers = #tpu.dot_dimension_numbers<[1], [0], [0], [1], [0, 0, 1, 1], [], []>} : vector<8x32xbf16>, vector<32x32xbf16>, vector<8x32xf32> -> vector<8x32xf32>
    %c0_17 = arith.constant 0 : index
    %c0_18 = arith.constant 0 : index
    %15 = vector.load %arg10[%c0_17, %c0_18] : memref<1x32xf32, #tpu.memory_space<vmem>>, vector<1x32xf32>
    %16 = vector.broadcast %15 : vector<1x32xf32> to vector<8x32xf32>
    %17 = arith.addf %14, %16 : vector<8x32xf32>
    %18 = vector.shape_cast %5 : vector<8x32xf32> to vector<8x4x8xf32>
    %19 = tpu.transpose %18, [1, 0, 2] : vector<8x4x8xf32> -> vector<4x8x8xf32>
    %20 = arith.truncf %19 : vector<4x8x8xf32> to vector<4x8x8xbf16>
    %21 = vector.shape_cast %11 : vector<8x32xf32> to vector<8x4x8xf32>
    %22 = tpu.transpose %21, [1, 0, 2] : vector<8x4x8xf32> -> vector<4x8x8xf32>
    %23 = arith.truncf %22 : vector<4x8x8xf32> to vector<4x8x8xbf16>
    %24 = vector.shape_cast %17 : vector<8x32xf32> to vector<8x4x8xf32>
    %25 = tpu.transpose %24, [1, 0, 2] : vector<8x4x8xf32> -> vector<4x8x8xf32>
    %26 = arith.truncf %25 : vector<4x8x8xf32> to vector<4x8x8xbf16>
    "tpu.trace_start"() <{level = 10 : i32, message = "hqd,hkd->hqk"}> : () -> ()
    %cst_19 = arith.constant dense<0.000000e+00> : vector<4x8x8xf32>
    %27 = tpu.matmul %20, %23, %cst_19 {dimension_numbers = #tpu.dot_dimension_numbers<[2], [2], [1], [1], [0, 0, 0, 1, 1, 1], [0], [0]>} : vector<4x8x8xbf16>, vector<4x8x8xbf16>, vector<4x8x8xf32> -> vector<4x8x8xf32>
    "tpu.trace_stop"() : () -> ()
    %c0_20 = arith.constant 0 : index
    %c0_21 = arith.constant 0 : index
    %28 = vector.load %arg4[%c0_20, %c0_21] : memref<8x8xf32, #tpu.memory_space<vmem>>, vector<8x8xf32>
    %29 = vector.shape_cast %28 : vector<8x8xf32> to vector<1x8x8xf32>
    %30 = vector.broadcast %29 : vector<1x8x8xf32> to vector<4x8x8xf32>
    %31 = arith.addf %27, %30 : vector<4x8x8xf32>
    %cst_22 = arith.constant dense<0xFF800000> : vector<4x8xf32>
    %32 = vector.multi_reduction <maximumf>, %31, %cst_22 [2] : vector<4x8x8xf32> to vector<4x8xf32>
    %33 = vector.shape_cast %32 : vector<4x8xf32> to vector<4x8x1xf32>
    %34 = vector.broadcast %33 : vector<4x8x1xf32> to vector<4x8x8xf32>
    %35 = arith.subf %31, %34 : vector<4x8x8xf32>
    %36 = math.exp %35 : vector<4x8x8xf32>
    %cst_23 = arith.constant dense<0.000000e+00> : vector<4x8xf32>
    %37 = vector.multi_reduction <add>, %36, %cst_23 [2] : vector<4x8x8xf32> to vector<4x8xf32>
    %38 = vector.shape_cast %37 : vector<4x8xf32> to vector<4x8x1xf32>
    %39 = tpu.reciprocal %38 {approx = true} : vector<4x8x1xf32> -> vector<4x8x1xf32>
    %40 = vector.broadcast %39 : vector<4x8x1xf32> to vector<4x8x8xf32>
    %41 = arith.mulf %36, %40 : vector<4x8x8xf32>
    %42 = arith.truncf %41 : vector<4x8x8xf32> to vector<4x8x8xbf16>
    "tpu.trace_start"() <{level = 10 : i32, message = "hqk,hkd->hqd"}> : () -> ()
    %cst_24 = arith.constant dense<0.000000e+00> : vector<4x8x8xf32>
    %43 = tpu.matmul %42, %26, %cst_24 {dimension_numbers = #tpu.dot_dimension_numbers<[2], [1], [1], [2], [0, 0, 0, 1, 1, 2], [0], [0]>} : vector<4x8x8xbf16>, vector<4x8x8xbf16>, vector<4x8x8xf32> -> vector<4x8x8xf32>
    "tpu.trace_stop"() : () -> ()
    %44 = tpu.transpose %43, [1, 0, 2] : vector<4x8x8xf32> -> vector<8x4x8xf32>
    %45 = vector.shape_cast %44 : vector<8x4x8xf32> to vector<8x32xf32>
    %46 = arith.truncf %45 : vector<8x32xf32> to vector<8x32xbf16>
    %c0_25 = arith.constant 0 : index
    %c0_26 = arith.constant 0 : index
    %47 = vector.load %arg11[%c0_25, %c0_26] : memref<32x32xbf16, #tpu.memory_space<vmem>>, vector<32x32xbf16>
    %cst_27 = arith.constant dense<0.000000e+00> : vector<8x32xf32>
    %48 = tpu.matmul %46, %47, %cst_27 {dimension_numbers = #tpu.dot_dimension_numbers<[1], [0], [0], [1], [0, 0, 1, 1], [], []>} : vector<8x32xbf16>, vector<32x32xbf16>, vector<8x32xf32> -> vector<8x32xf32>
    %c0_28 = arith.constant 0 : index
    %c0_29 = arith.constant 0 : index
    %49 = vector.load %arg12[%c0_28, %c0_29] : memref<1x32xf32, #tpu.memory_space<vmem>>, vector<1x32xf32>
    %50 = vector.broadcast %49 : vector<1x32xf32> to vector<8x32xf32>
    %51 = arith.addf %48, %50 : vector<8x32xf32>
    %c0_30 = arith.constant 0 : index
    %c0_31 = arith.constant 0 : index
    %52 = vector.load %arg13[%c0_30, %c0_31] : memref<8x32xf32, #tpu.memory_space<vmem>>, vector<8x32xf32>
    tpu.vector_store %arg13[%c0_30, %c0_31], %51 {strides = array<i32>} : memref<8x32xf32, #tpu.memory_space<vmem>>, vector<8x32xf32>,
    return
  }
  func.func @transform_0(%arg0: i32) -> (i32, i32) {
    %c0_i32 = arith.constant 0 : i32
    %c0_i32_0 = arith.constant 0 : i32
    return %arg0, %c0_i32 : i32, i32
  }
  func.func @transform_1(%arg0: i32) -> (i32, i32) {
    %c0_i32 = arith.constant 0 : i32
    %c0_i32_0 = arith.constant 0 : i32
    return %arg0, %c0_i32 : i32, i32
  }
  func.func @transform_2(%arg0: i32) -> (i32, i32) {
    %c0_i32 = arith.constant 0 : i32
    %c0_i32_0 = arith.constant 0 : i32
    return %arg0, %c0_i32 : i32, i32
  }
  func.func @transform_3(%arg0: i32) -> (i32, i32) {
    %c0_i32 = arith.constant 0 : i32
    %c0_i32_0 = arith.constant 0 : i32
    %c0_i32_1 = arith.constant 0 : i32
    return %c0_i32, %c0_i32_0 : i32, i32
  }
  func.func @transform_4(%arg0: i32) -> (i32, i32) {
    %c0_i32 = arith.constant 0 : i32
    %c0_i32_0 = arith.constant 0 : i32
    %c0_i32_1 = arith.constant 0 : i32
    return %c0_i32, %c0_i32_0 : i32, i32
  }
  func.func @transform_5(%arg0: i32) -> (i32, i32) {
    %c0_i32 = arith.constant 0 : i32
    %c0_i32_0 = arith.constant 0 : i32
    %c0_i32_1 = arith.constant 0 : i32
    return %c0_i32, %c0_i32_0 : i32, i32
  }
  func.func @transform_6(%arg0: i32) -> (i32, i32) {
    %c0_i32 = arith.constant 0 : i32
    %c0_i32_0 = arith.constant 0 : i32
    %c0_i32_1 = arith.constant 0 : i32
    return %c0_i32, %c0_i32_0 : i32, i32
  }
  func.func @transform_7(%arg0: i32) -> (i32, i32) {
    %c0_i32 = arith.constant 0 : i32
    %c0_i32_0 = arith.constant 0 : i32
    %c0_i32_1 = arith.constant 0 : i32
    return %c0_i32, %c0_i32_0 : i32, i32
  }
  func.func @transform_8(%arg0: i32) -> (i32, i32) {
    %c0_i32 = arith.constant 0 : i32
    %c0_i32_0 = arith.constant 0 : i32
    %c0_i32_1 = arith.constant 0 : i32
    return %c0_i32, %c0_i32_0 : i32, i32
  }
  func.func @transform_9(%arg0: i32) -> (i32, i32) {
    %c0_i32 = arith.constant 0 : i32
    %c0_i32_0 = arith.constant 0 : i32
    %c0_i32_1 = arith.constant 0 : i32
    return %c0_i32, %c0_i32_0 : i32, i32
  }
  func.func @transform_10(%arg0: i32) -> (i32, i32) {
    %c0_i32 = arith.constant 0 : i32
    %c0_i32_0 = arith.constant 0 : i32
    %c0_i32_1 = arith.constant 0 : i32
    return %c0_i32, %c0_i32_0 : i32, i32
  }
  func.func @transform_11(%arg0: i32) -> (i32, i32) {
    %c0_i32 = arith.constant 0 : i32
    %c0_i32_0 = arith.constant 0 : i32
    %c0_i32_1 = arith.constant 0 : i32
    return %c0_i32, %c0_i32_0 : i32, i32
  }
  func.func @transform_12(%arg0: i32) -> (i32, i32) {
    %c0_i32 = arith.constant 0 : i32
    %c0_i32_0 = arith.constant 0 : i32
    return %arg0, %c0_i32 : i32, i32
  }
}

</mosaic_0001>

<bundles_post_ra>
// kernel: tpu_custom_call.1
= control target key start
LH: loop header
LB: loop body
LE: loop exit
PB: predicated region body
PF: predicated region fallthrough
CT: control target
= control target key end

     0   :  { %s3211_s0 = inlined_call_operand.hbm [shape: bf16[16,32], index: 0, kind: input, shape index: {}]   ;;  %s3212_s1 = inlined_call_operand.hbm [shape: bf16[16,32], index: 1, kind: input, shape index: {}]   ;;  %s3213_s2 = inlined_call_operand.hbm [shape: bf16[16,32], index: 2, kind: input, shape index: {}]   ;;  %s3214_s3 = inlined_call_operand.hbm [shape: f32[8,8], index: 3, kind: input, shape index: {}]   ;;  %s3215_s4 = inlined_call_operand.hbm [shape: bf16[32,32], index: 4, kind: input, shape index: {}]   ;;  %s3216_s5 = inlined_call_operand.vmem [shape: f32[1,32], index: 5, kind: input, shape index: {}]   ;;  %s3217_s6 = inlined_call_operand.vmem [shape: bf16[32,32], index: 6, kind: input, shape index: {}]   ;;  %s3218_s7 = inlined_call_operand.vmem [shape: f32[1,32], index: 7, kind: input, shape index: {}]   ;;  %s3219_s8 = inlined_call_operand.hbm [shape: bf16[32,32], index: 8, kind: input, shape index: {}]   ;;  %s3220_s9 = inlined_call_operand.hbm [shape: f32[1,32], index: 9, kind: input, shape index: {}]   ;;  %s3221_s10 = inlined_call_operand.vmem [shape: bf16[32,32], index: 10, kind: input, shape index: {}]   ;;  %s3222_s11 = inlined_call_operand.vmem [shape: f32[1,32], index: 11, kind: input, shape index: {}]   ;;  %s3223_s12 = inlined_call_operand.hbm [shape: f32[16,32], index: 12, kind: output, shape index: {}]  }
   0x1   :  { %3248 = sst [smem:[#allocation26_spill]] %s3212_s1 }
   0x2   :  { %3249 = sst [smem:[#allocation27_spill]] %s3214_s3 }
   0x3   :  { %3250 = sst [smem:[#allocation28_spill]] %s3216_s5 }
   0x4   :  { %3251 = sst [smem:[#allocation29_spill]] %s3218_s7 }
   0x5   :  { %3252 = sst [smem:[#allocation30_spill]] %s3219_s8 }
   0x6   :  { %3253 = sst [smem:[#allocation31_spill]] %s3221_s10 }
   0x7   :  { %3254 = sst [smem:[#allocation32_spill]] %s3222_s11 }
   0x8   :  { %3255 = sst [smem:[#allocation33_spill]] %s3223_s12 }
   0x9   :  { %17 = vsyncpa [#allocation3], 0 }
   0xa   :  { %19 = vsyncpa [#allocation3 + $0x1], 0 }
   0xb   :  { %20 = vsyncpa [#allocation6], 0 }
   0xc   :  { %22 = vsyncpa [#allocation6 + $0x1], 0 }
   0xd   :  { %23 = vsyncpa [#allocation9], 0 }
   0xe   :  { %24 = vsyncpa [#allocation12], 0 }
   0xf   :  { %25 = vsyncpa [#allocation4], 0 }
  0x10   :  { %27 = vsyncpa [#allocation4 + $0x1], 0  ;;  %s2678_s21 = smov 0   ;;  %s2680_s22 = smov 0  }
  0x11   :  { %s2682_s23 = smov 0   ;;  %s2684_s24 = smov 0  }
  0x12 LB: > { %3256 = sst [smem:[#allocation20_spill]] %s2579_s21  ;;  %s2593_s25 = smov [#allocation8]   ;;  %s2591_s24 = sphi %s2684_s24, %s3301_s24   ;;  %s2587_s23 = sphi %s2682_s23, %s3305_s23   ;;  %s2583_s22 = sphi %s2680_s22, %s3304_s22   ;;  %s2579_s21 = sphi %s2678_s21, %s3303_s21  }
  0x13   : > { %3257 = sst [smem:[#allocation21_spill]] %s2591_s24  ;;  %s344_s26 = sshll.u32 %s2593_s25, 4  ;;  %s345_s26 = int_to_ptr.vmem [resolvable:$true] %s344_s26 }
  0x14   : > { %s2699_s27 = sadd.s32 4294967295, %s2591_s24   ;;  %p2013_p0 = scmp.ge.s32.totalorder %s2591_s24, 1 }
  0x15   : > { %p3224_p1 = scmp.eq.s32.totalorder %s2699_s27, 0  ;;  %p331_p2 = scmp.lt.s32.totalorder %s2591_s24, 3 }
  0x16   : > { %s2594_s29 = smov [#allocation11]   ;;  %s3260_s3 = sld [smem:[#allocation27_spill]] }
  0x17   : > { %p2704_p3 = pnand %p2013_p0, %p331_p2  ;;  %s376_s30 = sshll.u32 %s2594_s29, 4  ;;  %s2717_s30 = int_to_ptr.vmem [resolvable:$true] %s376_s30 }
  0x19   : > { %s3258_s28 = scalar_select %p2704_p3, 1, 0 }
  0x1a   : > { %p2202_p5 = pneg %p2704_p3 }
  0x1c   : > { %p2713_p6 = pnand %p2202_p5, %p3224_p1  ;;  %s2311_s16 = scalar_lea.hbm %s3260_s3, 128 }
  0x1d   : > { %p2312_p7 = scmp.ne.s32.totalorder %s3260_s3, %s2311_s16  ;;  %p2318_p11 = scmp.lt.u32.totalorder %s2311_s16, %s3260_s3 }
  0x1e   : > { %s3259_s13 = scalar_select %p2713_p6, 1, 0 }
  0x1f   : > { %p2727_p8 = pneg %p2713_p6 }
  0x21   : > { %s3261_s19 = scalar_select %p2727_p8, 1, 0 }
  0x22   : > { %p2314_p9 = pnand %p2727_p8, %p2312_p7 }
  0x24   : > { %p2315_p10 = pneg %p2314_p9 }
  0x26   : > { %p2320_p12 = pnand %p2318_p11, %p2315_p10 }
  0x28   : > { %2323 = shalt.err (!%p2320_p12)
}
  0x29   : > { %s2324_s29 = scalar_lea.vmem %s345_s26, 128  ;;  %p2332_p5 = scmp.lt.s32.totalorder %s345_s26, %s345_s26 }
  0x2a   : > { %p2325_p13 = scmp.ne.s32.totalorder %s345_s26, %s2324_s29  ;;  %p2333_p4 = scmp.lt.s32.totalorder %s2324_s29, %s2324_s29 }
  0x2c   : > { %p2327_p0 = pnand %p2325_p13, %p2727_p8  ;;  %p2334_p1 = por %p2333_p4, %p2332_p5 }
  0x2e   : > { %p2328_p2 = pneg %p2327_p0 }
  0x30   : > { %p2335_p3 = pnand %p2334_p1, %p2328_p2 }
  0x32   : > { %2338 = shalt.err (!%p2335_p3)
}
  0x33   : > { %2205 = dma.hbm_to_vmem [thread:$0]  (!%p2713_p6), %s3260_s3, 128, %s345_s26, [#allocation9]  }
  0x34   : > { %s3262_s8 = sld [smem:[#allocation30_spill]] }
  0x3a   : > { %s2339_s18 = scalar_lea.hbm %s3262_s8, 256 }
  0x3b   : > { %p2340_p7 = scmp.ne.s32.totalorder %s3262_s8, %s2339_s18  ;;  %p2346_p1 = scmp.lt.u32.totalorder %s2339_s18, %s3262_s8 }
  0x3d   : > { %p2342_p9 = pnand %p2340_p7, %p2727_p8 }
  0x3f   : > { %p2343_p4 = pneg %p2342_p9 }
  0x41   : > { %p2348_p3 = pnand %p2346_p1, %p2343_p4 }
  0x43   : > { %2351 = shalt.err (!%p2348_p3)
}
  0x44   : > { %s2352_s26 = scalar_lea.vmem %s2717_s30, 256  ;;  %p2360_p13 = scmp.lt.s32.totalorder %s2717_s30, %s2717_s30 }
  0x45   : > { %p2353_p10 = scmp.ne.s32.totalorder %s2717_s30, %s2352_s26  ;;  %p2361_p0 = scmp.lt.s32.totalorder %s2352_s26, %s2352_s26 }
  0x47   : > { %p2355_p11 = pnand %p2353_p10, %p2727_p8  ;;  %p2362_p2 = por %p2361_p0, %p2360_p13 }
  0x49   : > { %p2356_p12 = pneg %p2355_p11 }
  0x4b   : > { %p2363_p5 = pnand %p2362_p2, %p2356_p12 }
  0x4d   : > { %2366 = shalt.err (!%p2363_p5)
}
  0x4e   : > { %s3227_s14 = smov 64   ;;  %s3228_s12 = smov 4  }
  0x4f   : > { %2211 = dma.hbm_to_vmem [thread:$0]  (!%p2713_p6), %s3262_s8, 256, %s2717_s30, [#allocation12], %s3227_s14, %s3227_s14, %s3228_s12  }
  0x50   : > { %s2012_s17 = sadd.s32 4294967294, %s2591_s24   ;;  %s2771_s18 = sadd.s32 1, %s2591_s24  }
  0x51   : > { %3263 = sst [smem:[#allocation22_spill]] %s2771_s18  ;;  %s37_s20 = ssub.s32 %s2591_s24, %s2771_s18 }
  0x52   : > { %s40_s25 = sadd.s32 1, %s2587_s23  ;;  %p38_p7 = scmp.eq.s32.totalorder %s37_s20, 0 }
  0x53   : > { %p47_p9 = scmp.ne.s32.totalorder %s2587_s23, %s2583_s22  ;;  %p48_p4 = scmp.eq.s32.totalorder %s2591_s24, 0 }
  0x54   : > { %p53_p1 = scmp.ne.s32.totalorder %s2583_s22, %s2579_s21  ;;  %p3265_p10 = scmp.eq.s32.totalorder %s2699_s27, 0 }
  0x55   : > { %s2782_s29 = scalar_select %p38_p7, %s2587_s23, %s40_s25  }
  0x56   : > { %p49_p3 = por %p48_p4, %p47_p9  ;;  %p2786_p11 = por %p3265_p10, %p53_p1 }
  0x57   : > { %3264 = sst [smem:[#allocation23_spill]] %s2782_s29  ;;  %p318_p12 = scmp.eq.s32.totalorder %s2699_s27, 1 }
  0x58   : > { %s3266_s26 = scalar_select %p2786_p11, 1, 0 }
  0x59   : > { %p324_p13 = scmp.eq.s32.totalorder %s2012_s17, 1  ;;  %p2233_p0 = scmp.lt.s32.totalorder %s2591_s24, 2 }
  0x5a   : > { %s3229_s30 = sand.u32 1, %s2587_s23   ;;  %p2793_p2 = por %p318_p12, %p47_p9 }
  0x5b   : > { %p2797_p5 = por %p324_p13, %p53_p1  ;;  %s2803_s20 = sshll.u32 %s3229_s30, 2 }
  0x5c   : > { %s3267_s15 = scalar_select %p2793_p2, 1, 0 }
  0x5d   : > { %s3269_s16 = scalar_select %p2797_p5, 1, 0 }
  0x5e   : > { %3268 = sst [smem:[#allocation24_spill]] %s3267_s15  ;;  %s2806_s25 = sshll.u32 %s2591_s24, 6 }
  0x5f   : > { %3270 = sst [smem:[#allocation25_spill]] %s3269_s16  ;;  %p2808_p7 = pnand %p2233_p0, %p49_p3 }
  0x60   : > { %s425_s17 = sand.u32 1, %s2591_s24   ;;  %s3272_s1 = sld [smem:[#allocation26_spill]] }
  0x61   : > { %s3271_s14 = scalar_select %p2808_p7, 1, 0 }
  0x62   : > { %s429_s30 = scalar_lea.vmem [#allocation5], %s2803_s20  ;;  %s2597_s18 = smov [#allocation10]  }
  0x63   : > { %s436_s29 = sshll.u32 %s429_s30, 4  ;;  %s2822_s16 = sshll.u32 %s2597_s18, 4  ;;  %s2820_s29 = int_to_ptr.vmem [resolvable:$true] %s436_s29  ;;  %s355_s16 = int_to_ptr.vmem [resolvable:$true] %s2822_s16 }
  0x64   : > { %s2824_s21 = scalar_lea.sflag [#allocation6], %s425_s17  ;;  %p2830_p4 = pneg %p2808_p7 }
  0x66   : > { %s2817_s8 = scalar_lea.hbm %s3272_s1, %s2806_s25  ;;  %s2372_s24 = scalar_lea.hbm %s3272_s1, 128 }
  0x67   : > { %s2367_s15 = scalar_lea.hbm %s2817_s8, 64  ;;  %p2373_p10 = scmp.lt.u32.totalorder %s2817_s8, %s3272_s1 }
  0x68   : > { %p2368_p9 = scmp.ne.s32.totalorder %s2817_s8, %s2367_s15  ;;  %p2374_p12 = scmp.lt.u32.totalorder %s2372_s24, %s2367_s15 }
  0x69   : > { %s3273_s3 = scalar_select %p2830_p4, 1, 0 }
  0x6a   : > { %p2370_p1 = pnand %p2830_p4, %p2368_p9  ;;  %p2375_p13 = por %p2374_p12, %p2373_p10 }
  0x6b   : > { %p2376_p0 = scmp.lt.u32.totalorder %s2367_s15, %s2817_s8 }
  0x6c   : > { %p2371_p3 = pneg %p2370_p1 }
  0x6d   : > { %p2377_p5 = por %p2376_p0, %p2375_p13 }
  0x6f   : > { %p2378_p2 = pnand %p2377_p5, %p2371_p3 }
  0x71   : > { %2381 = shalt.err (!%p2378_p2)
}
  0x72   : > { %s2382_s17 = scalar_lea.vmem %s2820_s29, 64  ;;  %s2598_s12 = smov [#allocation5]  }
  0x73   : > { %p2383_p9 = scmp.ne.s32.totalorder %s2820_s29, %s2382_s17  ;;  %s2387_s30 = sshll.u32 %s2598_s12, 4  ;;  %s2388_s30 = int_to_ptr.vmem [resolvable:$false] %s2387_s30 }
  0x74   : > { %s2389_s11 = scalar_lea.vmem %s2388_s30, 128  ;;  %p2390_p6 = scmp.lt.s32.totalorder %s2820_s29, %s2388_s30 }
  0x75   : > { %p2385_p1 = pnand %p2383_p9, %p2830_p4  ;;  %p2391_p8 = scmp.lt.s32.totalorder %s2389_s11, %s2382_s17 }
  0x77   : > { %p2386_p11 = pneg %p2385_p1  ;;  %p2392_p10 = por %p2391_p8, %p2390_p6 }
  0x79   : > { %p2393_p12 = pnand %p2392_p10, %p2386_p11 }
  0x7b   : > { %2396 = shalt.err (!%p2393_p12)
}
  0x7c   : > { %2221 = dma.hbm_to_vmem [thread:$0]  (!%p2808_p7), %s2817_s8, 64, %s2820_s29, %s2824_s21  }
  0x7d   : > { %s2397_s18 = scalar_lea.hbm %s3215_s4, 256  ;;  %p3274_p6 = scmp.ne.s32.totalorder %s3261_s19, 0 }
  0x7e   : > { %p2398_p2 = scmp.ne.s32.totalorder %s3215_s4, %s2397_s18  ;;  %p2404_p5 = scmp.lt.u32.totalorder %s2397_s18, %s3215_s4 }
  0x80   : > { %p2400_p8 = pnand %p2398_p2, %p3274_p6 }
  0x82   : > { %p2401_p11 = pneg %p2400_p8 }
  0x84   : > { %p2406_p3 = pnand %p2404_p5, %p2401_p11 }
  0x86   : > { %2409 = shalt.err (!%p2406_p3)
}
  0x87   : > { %s2410_s11 = scalar_lea.vmem %s355_s16, 256  ;;  %p2418_p1 = scmp.lt.s32.totalorder %s355_s16, %s355_s16 }
  0x88   : > { %p2411_p13 = scmp.ne.s32.totalorder %s355_s16, %s2410_s11  ;;  %p2419_p10 = scmp.lt.s32.totalorder %s2410_s11, %s2410_s11 }
  0x8a   : > { %p2413_p0 = pnand %p2411_p13, %p3274_p6  ;;  %p2420_p12 = por %p2419_p10, %p2418_p1 }
  0x8c   : > { %p2414_p9 = pneg %p2413_p0 }
  0x8e   : > { %p2421_p7 = pnand %p2420_p12, %p2414_p9 }
  0x90   : > { %2424 = shalt.err (!%p2421_p7)
}
  0x91   : > { %p3275_p2 = scmp.ne.s32.totalorder %s3259_s13, 0  ;;  %s3276_s1 = smov 4  }
  0x92   : > { %s3277_s8 = smov 64   ;;  %s2599_s15 = smov [#allocation13]  }
  0x93   : > { %2208 = dma.hbm_to_vmem [thread:$0]  (!%p3275_p2), %s3215_s4, 256, %s355_s16, [#allocation9], %s3277_s8, %s3277_s8, %s3276_s1  }
  0x94   : > { %s390_s18 = sshll.u32 %s2599_s15, 4  ;;  %s2425_s30 = scalar_lea.hbm %s3220_s9, 16  ;;  %s391_s18 = int_to_ptr.vmem [resolvable:$true] %s390_s18 }
  0x95   : > { %p2426_p7 = scmp.ne.s32.totalorder %s3220_s9, %s2425_s30  ;;  %p2432_p5 = scmp.lt.u32.totalorder %s2425_s30, %s3220_s9 }
  0x97   : > { %p2428_p8 = pnand %p2426_p7, %p3274_p6 }
  0x99   : > { %p2429_p11 = pneg %p2428_p8 }
  0x9b   : > { %p2434_p3 = pnand %p2432_p5, %p2429_p11 }
  0x9d   : > { %2437 = shalt.err (!%p2434_p3)
}
  0x9e   : > { %s2438_s16 = scalar_lea.vmem %s391_s18, 16  ;;  %s2445_s1 = scalar_lea.vmem %s391_s18, 32 }
  0x9f   : > { %p2439_p13 = scmp.ne.s32.totalorder %s391_s18, %s2438_s16  ;;  %p2446_p1 = scmp.lt.s32.totalorder %s391_s18, %s391_s18 }
  0xa0   : > { %p2447_p10 = scmp.lt.s32.totalorder %s2445_s1, %s2438_s16 }
  0xa1   : > { %p2441_p0 = pnand %p2439_p13, %p3274_p6 }
  0xa2   : > { %p2448_p12 = por %p2447_p10, %p2446_p1 }
  0xa3   : > { %p2442_p9 = pneg %p2441_p0 }
  0xa5   : > { %p2449_p4 = pnand %p2448_p12, %p2442_p9 }
  0xa7   : > { %2452 = shalt.err (!%p2449_p4)
}
  0xa8   : > { %2214 = dma.hbm_to_vmem [thread:$0]  (!%p3275_p2), %s3220_s9, 16, %s391_s18, [#allocation12]  }
  0xa9   : > { %s2898_s19 = scalar_lea.hbm %s3211_s0, %s2806_s25  ;;  %s411_s29 = scalar_lea.vmem [#allocation2], %s2803_s20 }
  0xaa   : > { %s418_s24 = sshll.u32 %s411_s29, 4  ;;  %s3278_s13 = sand.u32 1, %s2587_s23   ;;  %s419_s24 = int_to_ptr.vmem [resolvable:$true] %s418_s24 }
  0xab   : > { %s408_s15 = scalar_lea.sflag [#allocation3], %s3278_s13  ;;  %s2453_s12 = scalar_lea.hbm %s2898_s19, 64 }
  0xac   : > { %p2454_p4 = scmp.ne.s32.totalorder %s2898_s19, %s2453_s12  ;;  %p3279_p6 = scmp.ne.s32.totalorder %s3273_s3, 0 }
  0xad   : > { %s2458_s30 = scalar_lea.hbm %s3211_s0, 128  ;;  %p2459_p2 = scmp.lt.u32.totalorder %s2898_s19, %s3211_s0 }
  0xae   : > { %p2456_p7 = pnand %p2454_p4, %p3279_p6  ;;  %p2460_p11 = scmp.lt.u32.totalorder %s2458_s30, %s2453_s12 }
  0xaf   : > { %p2462_p3 = scmp.lt.u32.totalorder %s2453_s12, %s2898_s19 }
  0xb0   : > { %p2457_p8 = pneg %p2456_p7  ;;  %p2461_p5 = por %p2460_p11, %p2459_p2 }
  0xb2   : > { %p2463_p13 = por %p2462_p3, %p2461_p5 }
  0xb4   : > { %p2464_p0 = pnand %p2463_p13, %p2457_p8 }
  0xb6   : > { %2467 = shalt.err (!%p2464_p0)
}
  0xb7   : > { %s2468_s1 = scalar_lea.vmem %s419_s24, 64  ;;  %s2600_s10 = smov [#allocation2]  }
  0xb8   : > { %p2469_p9 = scmp.ne.s32.totalorder %s419_s24, %s2468_s1  ;;  %s2473_s8 = sshll.u32 %s2600_s10, 4  ;;  %s2474_s8 = int_to_ptr.vmem [resolvable:$false] %s2473_s8 }
  0xb9   : > { %s2475_s5 = scalar_lea.vmem %s2474_s8, 128  ;;  %p2476_p12 = scmp.lt.s32.totalorder %s419_s24, %s2474_s8 }
  0xba   : > { %p2471_p1 = pnand %p2469_p9, %p3279_p6  ;;  %p2477_p4 = scmp.lt.s32.totalorder %s2475_s5, %s2468_s1 }
  0xbc   : > { %p2472_p10 = pneg %p2471_p1  ;;  %p2478_p7 = por %p2477_p4, %p2476_p12 }
  0xbe   : > { %p2479_p2 = pnand %p2478_p7, %p2472_p10 }
  0xc0   : > { %2482 = shalt.err (!%p2479_p2)
}
  0xc1   : > { %p3280_p11 = scmp.ne.s32.totalorder %s3271_s14, 0  ;;  %s2924_s13 = scalar_lea.hbm %s3213_s2, %s2806_s25 }
  0xc2   : > { %s447_s12 = scalar_lea.vmem [#allocation7], %s2803_s20  ;;  %s2483_s17 = scalar_lea.hbm %s2924_s13, 64 }
  0xc3   : > { %2218 = dma.hbm_to_vmem [thread:$0]  (!%p3280_p11), %s2898_s19, 64, %s419_s24, %s408_s15  }
  0xc4   : > { %s454_s18 = sshll.u32 %s447_s12, 4  ;;  %p2484_p8 = scmp.ne.s32.totalorder %s2924_s13, %s2483_s17  ;;  %s455_s18 = int_to_ptr.vmem [resolvable:$true] %s454_s18 }
  0xc5   : > { %s2488_s19 = scalar_lea.hbm %s3213_s2, 128  ;;  %p2489_p13 = scmp.lt.u32.totalorder %s2924_s13, %s3213_s2 }
  0xc6   : > { %p2486_p5 = pnand %p2484_p8, %p3279_p6  ;;  %p2490_p0 = scmp.lt.u32.totalorder %s2488_s19, %s2483_s17 }
  0xc7   : > { %p2492_p1 = scmp.lt.u32.totalorder %s2483_s17, %s2924_s13 }
  0xc8   : > { %p2487_p3 = pneg %p2486_p5  ;;  %p2491_p9 = por %p2490_p0, %p2489_p13 }
  0xca   : > { %p2493_p10 = por %p2492_p1, %p2491_p9 }
  0xcc   : > { %p2494_p12 = pnand %p2493_p10, %p2487_p3 }
  0xce   : > { %2497 = shalt.err (!%p2494_p12)
}
  0xcf   : > { %s2498_s20 = scalar_lea.vmem %s455_s18, 64  ;;  %s2601_s25 = smov [#allocation7]  }
  0xd0   : > { %p2499_p4 = scmp.ne.s32.totalorder %s455_s18, %s2498_s20  ;;  %s2503_s16 = sshll.u32 %s2601_s25, 4  ;;  %s2504_s16 = int_to_ptr.vmem [resolvable:$false] %s2503_s16 }
  0xd1   : > { %s2505_s1 = scalar_lea.vmem %s2504_s16, 128  ;;  %p2506_p8 = scmp.lt.s32.totalorder %s455_s18, %s2504_s16 }
  0xd2   : > { %p2501_p7 = pnand %p2499_p4, %p3279_p6  ;;  %p2507_p5 = scmp.lt.s32.totalorder %s2505_s1, %s2498_s20 }
  0xd4   : > { %p2502_p2 = pneg %p2501_p7  ;;  %p2508_p11 = por %p2507_p5, %p2506_p8 }
  0xd6   : > { %p2509_p0 = pnand %p2508_p11, %p2502_p2 }
  0xd8   : > { %2512 = shalt.err (!%p2509_p0)
}
  0xd9   : > { %p3281_p13 = scmp.ne.s32.totalorder %s3271_s14, 0  ;;  %p3282_p3 = scmp.ne.s32.totalorder %s3258_s28, 0 }
  0xda   : > { %s2948_s3 = sand.u32 (!%p3282_p3), 1, %s2583_s22   ;;  %p3283_p6 = scmp.ne.s32.totalorder (!%p3282_p3), %s3266_s26, 0 }
  0xdb   : > { %2224 = dma.hbm_to_vmem [thread:$0]  (!%p3281_p13), %s2924_s13, 64, %s455_s18, %s2824_s21  }
  0xdc   : > { %463 = sbr.rel (%p3282_p3) target bundleno = 1773 (0x6ed), region = 68  ;;  %s2951_s10 = sshll.u32 (!%p3282_p3), %s2948_s3, 2 }
  0xdd   : > { %s466_s8 = scalar_lea.sflag (!%p3282_p3), [#allocation3], %s2948_s3  ;;  %s469_s5 = scalar_lea.vmem (!%p3282_p3), [#allocation2], %s2951_s10 }
  0xe3   : > { %2558 = dma.done.wait (%p3283_p6), %s466_s8, 64  }
  0xe4   : > { %2560 = vsyncadd (%p3283_p6), %s466_s8, 4294967232  ;;  %s474_s21 = sand.u32 1, %s2699_s27   ;;  %s478_s14 = scalar_lea.vmem [#allocation5], %s2951_s10 }
  0xe5   : > { %s475_s28 = scalar_lea.sflag [#allocation6], %s474_s21 }
  0xe6   : > { %2562 = dma.done.wait (%p3283_p6), %s475_s28, 128  }
  0xe7   : > { %2564 = vsyncadd (%p3283_p6), %s475_s28, 4294967168  ;;  %s487_s7 = scalar_lea.vmem [#allocation7], %s2951_s10  ;;  %p3284_p11 = scmp.eq.s32.totalorder %s2699_s27, 0 }
  0xe9   : > { %2566 = dma.done.wait (%p3284_p11), [#allocation9], 384   ;;  %p3285_p9 = pmov %p3284_p11 }
  0xeb   : > { %2568 = vsyncadd (%p3285_p9), [#allocation9], 4294966912  ;;  %p3286_p1 = pmov %p3285_p9 }
  0xed   : > { %2570 = dma.done.wait (%p3286_p1), [#allocation12], 272   ;;  %p3287_p10 = pmov %p3286_p1 }
  0xee   : > { %v2602_v0 = vmov 0.0   ;;  %vm2603_vm0 = vmmov 0   ;;  %v2287_v1 = vld [vmem:[%s3217_s6] sm:$0xff]   ;;  %v2289_v3 = vld [vmem:[%s3217_s6 + $0x8] sm:$0xff]   ;;  %vm579_vm1 = vcmask 261120   ;;  %s3288_s30 = sld [smem:[#allocation29_spill]]  ;;  %v772_v24 = vlaneseq }
  0xef   : > { %2572 = vsyncadd (%p3287_p10), [#allocation12], 4294967024  ;;  %2106 = vmatprep.subr.bf16.mxu1 %v2602_v0  ;;  %2098 = vmatprep.subr.bf16.mxu0 %v2602_v0  ;;  %v2288_v2 = vld [vmem:[#allocation10] sm:$0xff]   ;;  %v623_v4 = vld [vmem:[%s478_s14] sm:$0xf]  ;;  %s3289_s24 = sld [smem:[#allocation28_spill]] }
  0xf0   : > { %2110 = vmatprep.mubr.msk.bf16.mxu1 %vm2603_vm0, %v2602_v0  ;;  %2102 = vmatprep.mubr.msk.bf16.mxu0 %vm2603_vm0, %v2602_v0  ;;  %v2290_v5 = vld [vmem:[#allocation10 + $0x8] sm:$0xff]   ;;  %v555_v6 = vld [vmem:[%s469_s5] sm:$0xf]  ;;  %v2291_v13 = vld [vmem:[#allocation11] sm:$0xff]   ;;  %s2604_s15 = smov 104   ;;  %s2605_s20 = smov 120  }
  0xf1   : > { %2107 = vmatpush3.bf16.msra.mxu1 %v2287_v1  ;;  %2099 = vmatpush3.bf16.msra.mxu0 %v2288_v2  ;;  %v2292_v20 = vld [vmem:[#allocation11 + $0x8] sm:$0xff]   ;;  %s2606_s25 = smov 112   ;;  %v690_v21 = vld [vmem:[%s487_s7] sm:$0xf]  ;;  %v2607_v22 = vmov 1983009808  }
  0xf2   : > { %2108 = vmatprep.subr.bf16.mxu1 %v2602_v0  ;;  %2100 = vmatprep.subr.bf16.mxu0 %v2602_v0  ;;  %v770_v23 = vunpack.c.l.s4 %v2607_v22  ;;  %v2608_v25 = vmov 1934713408   ;;  %v773_v28 = vshrl.u32 %v772_v24, 7  ;;  %vm1208_vm2 = vcmask 64512   ;;  %s3290_s10 = sld [smem:[#allocation31_spill]]  ;;  %s2609_s21 = smov 16  }
  0xf3   : > { %v802_v26 = vunpack.c.l.s4 %v2608_v25  ;;  %vm1444_vm3 = vcmask 1043456   ;;  %s2610_s28 = smov 8   ;;  %s2611_s14 = smov 24   ;;  %vm1775_vm4 = vcmask 130048   ;;  %vm1777_vm5 = vcmask 195584  }
  0xf4   : > { %v2038_v7 = vld [vmem:[%s3288_s30] ss:$0 sm:$0xff]  ;;  %v771_v27 = vunpack.c.0.s8 %v770_v23  ;;  %s2033_s7 = sshll.u32 %s2948_s3, 3  ;;  %s3291_s13 = sld [smem:[#allocation32_spill]] }
  0xf5   : > { %2109 = vmatpush3.bf16.msra.mxu1 %v2289_v3  ;;  %2101 = vmatpush3.bf16.msra.mxu0 %v2290_v5  ;;  %v2034_v9 = vld [vmem:[%s3289_s24] ss:$0 sm:$0xff]  ;;  %v803_v31 = vunpack.c.0.s8 %v802_v26  ;;  %s3292_s12 = sld [smem:[#allocation24_spill]]  ;;  %s2067_s18 = sshll.u32 %s2699_s27, 7 }
  0xf6   : > { %2122 = vmatprep.subr.bf16.mxu1 %v2602_v0  ;;  %2114 = vmatprep.subr.bf16.mxu0 %v2602_v0  ;;  %v3017_v32 = vsub.s32 %v771_v27, %v773_v28  ;;  %s553_s17 = scalar_lea.vmem [#allocation14], %s2033_s7  ;;  %s3293_s24 = sld [smem:[#allocation33_spill]] }
  0xf7   : > { %v3019_v39 = vsub.s32 %v803_v31, %v773_v28  ;;  %s1861_s30 = sshll.u32 %s553_s17, 4  ;;  %s1848_s27 = scalar_lea.sflag [#allocation4], %s2948_s3  ;;  %s3168_s30 = int_to_ptr.vmem [resolvable:$true] %s1861_s30 }
  0xf8   : > { %2111 = vmatmul.mubr.msk.bf16.vlgmr.msra.gmra.mrb[0].mxu1 %vm579_vm1, %v623_v4  ;;  %2103 = vmatmul.mubr.msk.bf16.vlgmr.msra.gmra.mrb[0].mxu0 %vm579_vm1, %v555_v6  ;;  %s2612_s16 = smov [#allocation14]  }
  0xf9   : > { %2124 = vmatprep.mubr.msk.bf16.mxu1 %vm2603_vm0, %v2602_v0  ;;  %2118 = vmatprep.mubr.msk.bf16.mxu0 %vm2603_vm0, %v2602_v0  ;;  %s2517_s1 = sshll.u32 %s2612_s16, 4  ;;  %s2518_s1 = int_to_ptr.vmem [resolvable:$false] %s2517_s1 }
  0xfa   : > { %2115 = vmatpush3.bf16.msra.mxu0 %v2291_v13  ;;  %s2519_s8 = scalar_lea.vmem %s2518_s1, 256  ;;  %p2520_p8 = scmp.lt.s32.totalorder %s3168_s30, %s2518_s1 }
  0xfb   : > { %2116 = vmatprep.subr.bf16.mxu0 %v2602_v0  ;;  %p3295_p4 = scmp.ne.s32.totalorder %s3292_s12, 0 }
  0xfe   : > { %2117 = vmatpush3.bf16.msra.mxu0 %v2292_v20 }
  0xff   : > { %2128 = vmatprep.subr.bf16.mxu0 %v2602_v0 }
 0x101   : > { %2119 = vmatmul.mubr.msk.bf16.vlgmr.msra.gmra.mrb[4].mxu0 %vm579_vm1, %v690_v21 }
 0x102   : > { %2130 = vmatprep.mubr.msk.bf16.mxu0 %vm2603_vm0, %v2602_v0 }
 0x1cb   : > { %v684_v8 = vpop.f32.mrb[0].mxu1  ;;  %v617_v12 = vpop.f32.mrb[0].mxu0 }
 0x1cc   : > { %v685_v10 = vadd.f32 %v2038_v7, %v684_v8  ;;  %v2112_v11 = vpop.f32.mrb[1].mxu1  ;;  %v2104_v15 = vpop.f32.mrb[1].mxu0  ;;  %v618_v17 = vadd.f32 %v2034_v9, %v617_v12 }
 0x1cd   : > { %v687_v14 = vpop.f32.mrb[2].mxu1  ;;  %v620_v18 = vpop.f32.mrb[2].mxu0 }
 0x1ce   : > { %914 = vrot.lane.b32.xlu1 %v685_v10, %s2604_s15  ;;  %908 = vrot.lane.b32.xlu0 %v685_v10, %s2605_s20  ;;  %v2113_v16 = vpop.f32.mrb[3].mxu1  ;;  %v2105_v19 = vpop.f32.mrb[3].mxu0 }
 0x1d2   : > { %911 = vrot.lane.b32.xlu0 %v685_v10, %s2606_s25  ;;  %758 = vrot.lane.b32.xlu1 %v618_v17, %s2605_s20 }
 0x1d6   : > { %761 = vrot.lane.b32.xlu0 %v618_v17, %s2606_s25  ;;  %764 = vrot.lane.b32.xlu1 %v618_v17, %s2604_s15 }
 0x240   : > { %v915_v29 = vpop.permute.xlu1 %914  ;;  %v909_v30 = vpop.permute.xlu0 %908 }
 0x241   : > { %v933_v33 = vcombine.low %v909_v30, %v915_v29  ;;  %v934_v34 = vcombine.high %v909_v30, %v915_v29 }
 0x243   : > { %v941_v40 = vrot.slane %v933_v33, %v3017_v32  ;;  %v948_v41 = vrot.slane %v934_v34, %v3017_v32 }
 0x244   : > { %v912_v35 = vpop.permute.xlu0 %911  ;;  %v759_v36 = vpop.permute.xlu1 %758 }
 0x245   : > { %v917_v37 = vcombine.low %v685_v10, %v912_v35  ;;  %v918_v38 = vcombine.high %v685_v10, %v912_v35 }
 0x247   : > { %v925_v42 = vrot.slane %v917_v37, %v3017_v32  ;;  %v932_v43 = vrot.slane %v918_v38, %v3017_v32 }
 0x248   : > { %v762_v44 = vpop.permute.xlu0 %761  ;;  %v765_v45 = vpop.permute.xlu1 %764 }
 0x249   : > { %v949_v46 = vcombine.low %v925_v42, %v941_v40  ;;  %v950_v47 = vcombine.high %v925_v42, %v941_v40  ;;  %v965_v48 = vcombine.low %v932_v43, %v948_v41  ;;  %v966_v49 = vcombine.high %v932_v43, %v948_v41 }
 0x24a   : > { %v767_v50 = vcombine.low %v618_v17, %v762_v44  ;;  %v768_v51 = vcombine.high %v618_v17, %v762_v44  ;;  %v783_v52 = vcombine.low %v759_v36, %v765_v45  ;;  %v784_v53 = vcombine.high %v759_v36, %v765_v45 }
 0x24b   : > { %v957_v54 = vrot.slane %v949_v46, %v3019_v39  ;;  %v964_v55 = vrot.slane %v950_v47, %v3019_v39  ;;  %v973_v56 = vrot.slane %v965_v48, %v3019_v39  ;;  %v980_v57 = vrot.slane %v966_v49, %v3019_v39 }
 0x24c   : > { %v775_v58 = vrot.slane %v767_v50, %v3017_v32  ;;  %v782_v59 = vrot.slane %v768_v51, %v3017_v32  ;;  %v791_v60 = vrot.slane %v783_v52, %v3017_v32  ;;  %v798_v61 = vrot.slane %v784_v53, %v3017_v32 }
 0x24d   : > { %v985_v62 = vcombine.low %v957_v54, %v964_v55  ;;  %v2048_v63 = vcombine.high %v957_v54, %v964_v55  ;;  %v1001_v1 = vcombine.low %v973_v56, %v980_v57  ;;  %v2049_v2 = vcombine.high %v973_v56, %v980_v57 }
 0x24e   : > { %v799_v3 = vcombine.low %v775_v58, %v791_v60  ;;  %v800_v4 = vcombine.high %v775_v58, %v791_v60  ;;  %v815_v5 = vcombine.low %v782_v59, %v798_v61  ;;  %v816_v6 = vcombine.high %v782_v59, %v798_v61  ;;  %v751_v61 = vpop.f32.mrb[4].mxu0 }
 0x24f   : > { %v992_v7 = vrot.slane %v985_v62, %v3017_v32  ;;  %v1000_v8 = vrot.slane %v2048_v63, %v3017_v32  ;;  %v1008_v9 = vrot.slane %v1001_v1, %v3017_v32  ;;  %v1016_v10 = vrot.slane %v2049_v2, %v3017_v32  ;;  %v2120_v62 = vpop.f32.mrb[5].mxu0  ;;  %v1207_v2 = vld [vmem:[#allocation8] sm:$0xff] }
 0x250   : > { %v807_v11 = vrot.slane %v799_v3, %v3019_v39  ;;  %v814_v12 = vrot.slane %v800_v4, %v3019_v39  ;;  %v823_v13 = vrot.slane %v815_v5, %v3019_v39  ;;  %v830_v14 = vrot.slane %v816_v6, %v3019_v39  ;;  %v754_v63 = vpop.f32.mrb[6].mxu0 }
 0x251   : > { %v1017_v15 = vcombine.low %v992_v7, %v1000_v8  ;;  %v1033_v16 = vcombine.low %v1008_v9, %v1016_v10  ;;  %v1018_v17 = vcombine.high %v992_v7, %v1000_v8  ;;  %v1034_v18 = vcombine.high %v1008_v9, %v1016_v10  ;;  %v2121_v1 = vpop.f32.mrb[7].mxu0 }
 0x252   : > { %v835_v19 = vcombine.low %v807_v11, %v814_v12  ;;  %v2046_v20 = vcombine.high %v807_v11, %v814_v12  ;;  %v851_v21 = vcombine.low %v823_v13, %v830_v14  ;;  %v2047_v22 = vcombine.high %v823_v13, %v830_v14 }
 0x253   : > { %v1025_v23 = vrot.slane %v1017_v15, %v3019_v39  ;;  %v1041_v24 = vrot.slane %v1033_v16, %v3019_v39  ;;  %v1032_v31 = vrot.slane %v1018_v17, %v3019_v39  ;;  %v1048_v33 = vrot.slane %v1034_v18, %v3019_v39 }
 0x254   : > { %v842_v25 = vrot.slane %v835_v19, %v3017_v32  ;;  %v850_v26 = vrot.slane %v2046_v20, %v3017_v32  ;;  %v858_v27 = vrot.slane %v851_v21, %v3017_v32  ;;  %v866_v28 = vrot.slane %v2047_v22, %v3017_v32 }
 0x255   : > { %v1049_v29 = vcombine.low %v1025_v23, %v1041_v24  ;;  %v1050_v30 = vcombine.high %v1025_v23, %v1041_v24  ;;  %v1051_v43 = vcombine.low %v1032_v31, %v1048_v33  ;;  %v1052_v44 = vcombine.high %v1032_v31, %v1048_v33 }
 0x256   : > { %v867_v34 = vcombine.low %v842_v25, %v850_v26  ;;  %v883_v35 = vcombine.low %v858_v27, %v866_v28  ;;  %v868_v45 = vcombine.high %v842_v25, %v850_v26  ;;  %v884_v46 = vcombine.high %v858_v27, %v866_v28  ;;  %v2042_v27 = vld [vmem:[#allocation13] ss:$0 sm:$0xff] }
 0x257   : > { %v1053_v36 = vpack.c.bf16 %v1049_v29, %v1049_v29  ;;  %v1054_v37 = vpack.c.bf16 %v1050_v30, %v1050_v30  ;;  %v1055_v49 = vpack.c.bf16 %v1051_v43, %v1051_v43  ;;  %v1056_v50 = vpack.c.bf16 %v1052_v44, %v1052_v44 }
 0x258   : > { %v875_v38 = vrot.slane %v867_v34, %v3019_v39  ;;  %v891_v40 = vrot.slane %v883_v35, %v3019_v39  ;;  %v882_v53 = vrot.slane %v868_v45, %v3019_v39  ;;  %v898_v54 = vrot.slane %v884_v46, %v3019_v39 }
 0x259   : > { %v1213_v41 = vsel %vm1208_vm2, %v1053_v36, 0  ;;  %v1259_v42 = vsel %vm1208_vm2, %v1054_v37, 0  ;;  %v1305_v55 = vsel %vm1208_vm2, %v1055_v49, 0  ;;  %v1351_v56 = vsel %vm1208_vm2, %v1056_v50, 0 }
 0x25a   : > { %2123 = vmatpush3.bf16.xpose.msra.mxu1 %v1213_v41  ;;  %2129 = vmatpush3.bf16.xpose.msra.mxu0 %v1259_v42  ;;  %v899_v47 = vcombine.low %v875_v38, %v891_v40  ;;  %v900_v48 = vcombine.high %v875_v38, %v891_v40  ;;  %v901_v57 = vcombine.low %v882_v53, %v898_v54 }
 0x25b   : > { %2134 = vmatprep.subr.bf16.mxu1 %v2602_v0  ;;  %2140 = vmatprep.subr.bf16.mxu0 %v2602_v0  ;;  %v902_v58 = vcombine.high %v882_v53, %v898_v54  ;;  %v752_v28 = vadd.f32 %v2042_v27, %v751_v61 }
 0x25c   : > { %v903_v51 = vpack.c.bf16 %v899_v47, %v899_v47  ;;  %v904_v52 = vpack.c.bf16 %v900_v48, %v900_v48  ;;  %v905_v59 = vpack.c.bf16 %v901_v57, %v901_v57 }
 0x25d   : > { %v906_v60 = vpack.c.bf16 %v902_v58, %v902_v58 }
 0x261   : > { %2125 = vmatmul.mubr.msk.bf16.vlgmr.msra.gmra.mrb[4].mxu1 %vm1208_vm2, %v903_v51  ;;  %2131 = vmatmul.mubr.msk.bf16.vlgmr.msra.gmra.mrb[8].mxu0 %vm1208_vm2, %v904_v52 }
 0x262   : > { %2135 = vmatpush3.bf16.xpose.msra.mxu1 %v1305_v55  ;;  %2141 = vmatpush3.bf16.xpose.msra.mxu0 %v1351_v56 }
 0x263   : > { %2136 = vmatprep.mubr.msk.bf16.mxu1 %vm2603_vm0, %v2602_v0  ;;  %2142 = vmatprep.mubr.msk.bf16.mxu0 %vm2603_vm0, %v2602_v0 }
 0x264   : > { %2146 = vmatprep.subr.bf16.mxu1 %v2602_v0  ;;  %2152 = vmatprep.subr.bf16.mxu0 %v2602_v0 }
 0x269   : > { %2137 = vmatmul.mubr.msk.bf16.vlgmr.msra.gmra.mrb[8].mxu1 %vm1208_vm2, %v905_v59  ;;  %2143 = vmatmul.mubr.msk.bf16.vlgmr.msra.gmra.mrb[12].mxu0 %vm1208_vm2, %v906_v60 }
 0x26a   : > { %2148 = vmatprep.mubr.msk.bf16.mxu1 %vm2603_vm0, %v2602_v0  ;;  %2154 = vmatprep.mubr.msk.bf16.mxu0 %vm2603_vm0, %v2602_v0 }
 0x334   : > { %v1249_v3 = vpop.f32.mrb[4].mxu1  ;;  %v1295_v4 = vpop.f32.mrb[8].mxu0 }
 0x335   : > { %v1250_v5 = vadd.f32 %v1249_v3, %v1207_v2  ;;  %v1296_v6 = vadd.f32 %v1295_v4, %v1207_v2  ;;  %v2126_v7 = vpop.f32.mrb[5].mxu1  ;;  %v2132_v8 = vpop.f32.mrb[9].mxu0 }
 0x336   : > { %v1252_v9 = vpop.f32.mrb[6].mxu1  ;;  %v1298_v10 = vpop.f32.mrb[10].mxu0 }
 0x337   : > { %v2127_v11 = vpop.f32.mrb[7].mxu1  ;;  %v2133_v12 = vpop.f32.mrb[11].mxu0  ;;  %v1393_v13 = vsel %vm1208_vm2, %v1250_v5, -inf  ;;  %v1396_v14 = vsel %vm1208_vm2, %v1296_v6, -inf }
 0x338   : > { %1394 = vmax.xlane.f32.xlu0 %v1393_v13  ;;  %1397 = vmax.xlane.f32.xlu1 %v1396_v14 }
 0x33c   : > { %v1341_v15 = vpop.f32.mrb[8].mxu1  ;;  %v1387_v16 = vpop.f32.mrb[12].mxu0 }
 0x33d   : > { %v1342_v17 = vadd.f32 %v1341_v15, %v1207_v2  ;;  %v2138_v18 = vpop.f32.mrb[9].mxu1  ;;  %v2144_v19 = vpop.f32.mrb[13].mxu0  ;;  %v1388_v22 = vadd.f32 %v1387_v16, %v1207_v2 }
 0x33e   : > { %v1344_v20 = vpop.f32.mrb[10].mxu1  ;;  %v1390_v21 = vpop.f32.mrb[14].mxu0 }
 0x33f   : > { %v2139_v23 = vpop.f32.mrb[11].mxu1  ;;  %v2145_v24 = vpop.f32.mrb[15].mxu0  ;;  %v1399_v25 = vsel %vm1208_vm2, %v1342_v17, -inf  ;;  %v1402_v26 = vsel %vm1208_vm2, %v1388_v22, -inf }
 0x340   : > { %1400 = vmax.xlane.f32.xlu0 %v1399_v25 }
 0x344   : > { %1403 = vmax.xlane.f32.xlu0 %v1402_v26 }
 0x349   : > { %1058 = vrot.lane.b32.xlu1 %v752_v28, %s2605_s20  ;;  %s3166_s20 = scalar_lea.hbm %s3293_s24, %s2067_s18 }
 0x3c5   : > { %v1395_v29 = vpop.xlane.xlu0 %1394  ;;  %v1398_v30 = vpop.xlane.xlu1 %1397 }
 0x3c6   : > { %v1405_v31 = vsub.f32 %v1250_v5, %v1395_v29  ;;  %v1406_v33 = vsub.f32 %v1296_v6, %v1398_v30 }
 0x3c8   : > { %v1409_v34 = vmul.f32 1.442695, %v1405_v31  ;;  %v1411_v35 = vmul.f32 1.442695, %v1406_v33 }
 0x3c9   : > { %v1059_v51 = vpop.permute.xlu1 %1058 }
 0x3ca   : > { %2295 = vpow2.f32 %v1409_v34 }
 0x3cb   : > { %2297 = vpow2.f32 %v1411_v35 }
 0x3cd   : > { %v1401_v41 = vpop.xlane.xlu0 %1400 }
 0x3ce   : > { %v1407_v43 = vsub.f32 %v1342_v17, %v1401_v41 }
 0x3d0   : > { %v1413_v45 = vmul.f32 1.442695, %v1407_v43 }
 0x3d1   : > { %v1404_v42 = vpop.xlane.xlu0 %1403 }
 0x3d2   : > { %v1408_v44 = vsub.f32 %v1388_v22, %v1404_v42  ;;  %2299 = vpow2.f32 %v1413_v45 }
 0x3d4   : > { %v3078_v36 = vpop.eup %2295  ;;  %v1415_v46 = vmul.f32 1.442695, %v1408_v44 }
 0x3d5   : > { %v3080_v37 = vpop.eup %2297  ;;  %v1417_v38 = vsel %vm1208_vm2, %v3078_v36, 0.0 }
 0x3d6   : > { %1418 = vadd.xlane.f32.xlu1 %v1417_v38  ;;  %v1420_v40 = vsel %vm1208_vm2, %v3080_v37, 0.0  ;;  %2301 = vpow2.f32 %v1415_v46 }
 0x3d7   : > { %1421 = vadd.xlane.f32.xlu0 %v1420_v40 }
 0x3dc   : > { %v3088_v47 = vpop.eup %2299 }
 0x3dd   : > { %v1423_v49 = vsel %vm1208_vm2, %v3088_v47, 0.0 }
 0x3e0   : > { %v3090_v48 = vpop.eup %2301 }
 0x3e1   : > { %v1426_v50 = vsel %vm1208_vm2, %v3090_v48, 0.0 }
 0x3e7   : > { %1064 = vrot.lane.b32.xlu1 %v752_v28, %s2604_s15  ;;  %s3294_s15 = smov %s3293_s24 }
 0x3ed   : > { %1061 = vrot.lane.b32.xlu0 %v752_v28, %s2606_s25  ;;  %s2513_s25 = scalar_lea.vmem %s3168_s30, 128 }
 0x3ee   : > { %p2514_p12 = scmp.ne.s32.totalorder %s3168_s30, %s2513_s25  ;;  %p2521_p5 = scmp.lt.s32.totalorder %s2519_s8, %s2513_s25 }
 0x3f0   : > { %p2515_p7 = pnand %p2514_p12, %p3295_p4  ;;  %p2522_p0 = por %p2521_p5, %p2520_p8 }
 0x3f2   : > { %p2516_p2 = pneg %p2515_p7 }
 0x3f4   : > { %p2523_p13 = pnand %p2522_p0, %p2516_p2 }
 0x40b   : > { %1424 = vadd.xlane.f32.xlu1 %v1423_v49 }
 0x40c   : > { %1427 = vadd.xlane.f32.xlu0 %v1426_v50 }
 0x463   : > { %v1419_v52 = vpop.xlane.xlu1 %1418 }
 0x464   : > { %v1422_v53 = vpop.xlane.xlu0 %1421  ;;  %2303 = vrcp.f32 %v1419_v52 }
 0x465   : > { %2305 = vrcp.f32 %v1422_v53 }
 0x467   : > { %v1065_v54 = vpop.permute.xlu1 %1064 }
 0x468   : > { %v1083_v55 = vcombine.low %v1059_v51, %v1065_v54  ;;  %v1084_v56 = vcombine.high %v1059_v51, %v1065_v54  ;;  %v1062_v57 = vpop.permute.xlu0 %1061 }
 0x469   : > { %v1067_v58 = vcombine.low %v752_v28, %v1062_v57  ;;  %v1068_v59 = vcombine.high %v752_v28, %v1062_v57 }
 0x46a   : > { %v1091_v60 = vrot.slane %v1083_v55, %v3017_v32  ;;  %v1098_v61 = vrot.slane %v1084_v56, %v3017_v32 }
 0x46b   : > { %v1075_v62 = vrot.slane %v1067_v58, %v3017_v32  ;;  %v1082_v63 = vrot.slane %v1068_v59, %v3017_v32 }
 0x46d   : > { %v1099_v1 = vcombine.low %v1075_v62, %v1091_v60  ;;  %v1100_v2 = vcombine.high %v1075_v62, %v1091_v60  ;;  %v1115_v3 = vcombine.low %v1082_v63, %v1098_v61  ;;  %v1116_v4 = vcombine.high %v1082_v63, %v1098_v61 }
 0x46e   : > { %v2304_v23 = vpop.eup %2303 }
 0x46f   : > { %v1107_v5 = vrot.slane %v1099_v1, %v3019_v39  ;;  %v1114_v6 = vrot.slane %v1100_v2, %v3019_v39  ;;  %v1123_v7 = vrot.slane %v1115_v3, %v3019_v39  ;;  %v1130_v8 = vrot.slane %v1116_v4, %v3019_v39  ;;  %v2306_v26 = vpop.eup %2305 }
 0x470   : > { %v1433_v31 = vmul.f32 %v2304_v23, %v3078_v36  ;;  %v1434_v33 = vmul.f32 %v2306_v26, %v3080_v37 }
 0x471   : > { %v1135_v9 = vcombine.low %v1107_v5, %v1114_v6  ;;  %v2050_v10 = vcombine.high %v1107_v5, %v1114_v6  ;;  %v1151_v11 = vcombine.low %v1123_v7, %v1130_v8  ;;  %v2051_v12 = vcombine.high %v1123_v7, %v1130_v8 }
 0x472   : > { %v1437_v43 = vpack.c.bf16 %v1433_v31, %v1433_v31  ;;  %v1438_v44 = vpack.c.bf16 %v1434_v33, %v1434_v33 }
 0x473   : > { %v1142_v13 = vrot.slane %v1135_v9, %v3017_v32  ;;  %v1150_v14 = vrot.slane %v2050_v10, %v3017_v32  ;;  %v1158_v15 = vrot.slane %v1151_v11, %v3017_v32  ;;  %v1166_v16 = vrot.slane %v2051_v12, %v3017_v32 }
 0x475   : > { %v1167_v17 = vcombine.low %v1142_v13, %v1150_v14  ;;  %v1168_v18 = vcombine.high %v1142_v13, %v1150_v14  ;;  %v1183_v19 = vcombine.low %v1158_v15, %v1166_v16  ;;  %v1184_v20 = vcombine.high %v1158_v15, %v1166_v16 }
 0x477   : > { %v1175_v21 = vrot.slane %v1167_v17, %v3019_v39  ;;  %v1182_v22 = vrot.slane %v1168_v18, %v3019_v39  ;;  %v1191_v24 = vrot.slane %v1183_v19, %v3019_v39  ;;  %v1198_v25 = vrot.slane %v1184_v20, %v3019_v39  ;;  %v2293_v18 = vld [vmem:[%s3290_s10] sm:$0xff]  }
 0x479   : > { %v1199_v27 = vcombine.low %v1175_v21, %v1191_v24  ;;  %v1200_v28 = vcombine.high %v1175_v21, %v1191_v24  ;;  %v1201_v29 = vcombine.low %v1182_v22, %v1198_v25  ;;  %v1202_v30 = vcombine.high %v1182_v22, %v1198_v25 }
 0x47b   : > { %v1203_v34 = vpack.c.bf16 %v1199_v27, %v1199_v27  ;;  %v1204_v35 = vpack.c.bf16 %v1200_v28, %v1200_v28  ;;  %v1205_v41 = vpack.c.bf16 %v1201_v29, %v1201_v29  ;;  %v1206_v42 = vpack.c.bf16 %v1202_v30, %v1202_v30  ;;  %v2294_v27 = vld [vmem:[%s3290_s10 + $0x8] sm:$0xff]  }
 0x47d   : > { %v1446_v38 = vsel %vm1444_vm3, %v1203_v34, 0  ;;  %v1492_v40 = vsel %vm1444_vm3, %v1204_v35, 0  ;;  %v1538_v36 = vsel %vm1444_vm3, %v1205_v41, 0  ;;  %v1584_v37 = vsel %vm1444_vm3, %v1206_v42, 0 }
 0x47e   : > { %2147 = vmatpush3.bf16.msra.mxu1 %v1446_v38  ;;  %2153 = vmatpush3.bf16.msra.mxu0 %v1492_v40 }
 0x47f   : > { %2158 = vmatprep.subr.bf16.mxu1 %v2602_v0  ;;  %2164 = vmatprep.subr.bf16.mxu0 %v2602_v0 }
 0x481   : > { %2149 = vmatmul.mubr.msk.bf16.vlgmr.msra.gmra.mrb[12].mxu1 %vm1208_vm2, %v1437_v43  ;;  %2155 = vmatmul.mubr.msk.bf16.vlgmr.msra.gmra.mrb[16].mxu0 %vm1208_vm2, %v1438_v44 }
 0x482   : > { %2159 = vmatpush3.bf16.msra.mxu1 %v1538_v36  ;;  %2165 = vmatpush3.bf16.msra.mxu0 %v1584_v37 }
 0x483   : > { %2160 = vmatprep.mubr.msk.bf16.mxu1 %vm2603_vm0, %v2602_v0  ;;  %2166 = vmatprep.mubr.msk.bf16.mxu0 %vm2603_vm0, %v2602_v0 }
 0x484   : > { %2170 = vmatprep.subr.bf16.mxu1 %v2602_v0 }
 0x498   : > { %v1425_v45 = vpop.xlane.xlu1 %1424 }
 0x499   : > { %2307 = vrcp.f32 %v1425_v45  ;;  %v1428_v46 = vpop.xlane.xlu0 %1427 }
 0x49a   : > { %2309 = vrcp.f32 %v1428_v46 }
 0x4a3   : > { %v2308_v49 = vpop.eup %2307 }
 0x4a4   : > { %v2310_v50 = vpop.eup %2309  ;;  %v1435_v51 = vmul.f32 %v2308_v49, %v3088_v47 }
 0x4a5   : > { %v1436_v52 = vmul.f32 %v2310_v50, %v3090_v48 }
 0x4a6   : > { %v1439_v53 = vpack.c.bf16 %v1435_v51, %v1435_v51 }
 0x4a7   : > { %v1440_v54 = vpack.c.bf16 %v1436_v52, %v1436_v52  ;;  %v2062_v52 = vld [vmem:[%s3291_s13] ss:$0 sm:$0xff] }
 0x4a8   : > { %2161 = vmatmul.mubr.msk.bf16.vlgmr.msra.gmra.mrb[16].mxu1 %vm1208_vm2, %v1439_v53 }
 0x4a9   : > { %2167 = vmatmul.mubr.msk.bf16.vlgmr.msra.gmra.mrb[20].mxu0 %vm1208_vm2, %v1440_v54  ;;  %2174 = vmatprep.mubr.msk.bf16.mxu1 %vm2603_vm0, %v2602_v0 }
 0x4aa   : > { %2171 = vmatpush3.bf16.msra.mxu1 %v2293_v18 }
 0x4ab   : > { %2172 = vmatprep.subr.bf16.mxu1 %v2602_v0 }
 0x4ae   : > { %2173 = vmatpush3.bf16.msra.mxu1 %v2294_v27 }
 0x554   : > { %v1482_v55 = vpop.f32.mrb[12].mxu1  ;;  %v1528_v56 = vpop.f32.mrb[16].mxu0 }
 0x555   : > { %v2150_v57 = vpop.f32.mrb[13].mxu1  ;;  %v2156_v58 = vpop.f32.mrb[17].mxu0 }
 0x556   : > { %v1485_v59 = vpop.f32.mrb[14].mxu1  ;;  %v1531_v60 = vpop.f32.mrb[18].mxu0 }
 0x557   : > { %v2151_v61 = vpop.f32.mrb[15].mxu1  ;;  %v2157_v62 = vpop.f32.mrb[19].mxu0 }
 0x57b   : > { %v1574_v47 = vpop.f32.mrb[16].mxu1 }
 0x57c   : > { %v1626_v63 = vcombine.low %v1482_v55, %v1574_v47  ;;  %v1627_v48 = vcombine.high %v1482_v55, %v1574_v47  ;;  %v1620_v1 = vpop.f32.mrb[20].mxu0  ;;  %v2162_v2 = vpop.f32.mrb[17].mxu1 }
 0x57d   : > { %v1642_v3 = vcombine.low %v1528_v56, %v1620_v1  ;;  %v1643_v4 = vcombine.high %v1528_v56, %v1620_v1  ;;  %v2168_v5 = vpop.f32.mrb[21].mxu0  ;;  %v1577_v6 = vpop.f32.mrb[18].mxu1 }
 0x57e   : > { %v1634_v7 = vrot.slane %v1626_v63, %v3017_v32  ;;  %v1641_v8 = vrot.slane %v1627_v48, %v3017_v32  ;;  %v1623_v9 = vpop.f32.mrb[22].mxu0  ;;  %v2163_v10 = vpop.f32.mrb[19].mxu1 }
 0x57f   : > { %v1650_v11 = vrot.slane %v1642_v3, %v3017_v32  ;;  %v1657_v12 = vrot.slane %v1643_v4, %v3017_v32  ;;  %v2169_v13 = vpop.f32.mrb[23].mxu0 }
 0x581   : > { %v1658_v14 = vcombine.low %v1634_v7, %v1650_v11  ;;  %v1659_v15 = vcombine.high %v1634_v7, %v1650_v11  ;;  %v1674_v16 = vcombine.low %v1641_v8, %v1657_v12  ;;  %v1675_v17 = vcombine.high %v1641_v8, %v1657_v12 }
 0x583   : > { %v1666_v19 = vrot.slane %v1658_v14, %v3019_v39  ;;  %v1673_v20 = vrot.slane %v1659_v15, %v3019_v39  ;;  %v1682_v21 = vrot.slane %v1674_v16, %v3019_v39  ;;  %v1689_v22 = vrot.slane %v1675_v17, %v3019_v39 }
 0x585   : > { %v1694_v23 = vcombine.low %v1666_v19, %v1673_v20  ;;  %v2060_v24 = vcombine.high %v1666_v19, %v1673_v20  ;;  %v1710_v25 = vcombine.low %v1682_v21, %v1689_v22  ;;  %v2061_v26 = vcombine.high %v1682_v21, %v1689_v22 }
 0x587   : > { %v1701_v28 = vrot.slane %v1694_v23, %v3017_v32  ;;  %v1709_v29 = vrot.slane %v2060_v24, %v3017_v32  ;;  %v1717_v30 = vrot.slane %v1710_v25, %v3017_v32  ;;  %v1725_v31 = vrot.slane %v2061_v26, %v3017_v32 }
 0x589   : > { %v1727_v33 = vcombine.high %v1701_v28, %v1709_v29  ;;  %v1743_v34 = vcombine.high %v1717_v30, %v1725_v31  ;;  %v1726_v0 = vcombine.low %v1701_v28, %v1709_v29  ;;  %v1742_v35 = vcombine.low %v1717_v30, %v1725_v31 }
 0x58b   : > { %v1741_v38 = vrot.slane %v1727_v33, %v3019_v39  ;;  %v1757_v40 = vrot.slane %v1743_v34, %v3019_v39  ;;  %v1734_v41 = vrot.slane %v1726_v0, %v3019_v39  ;;  %v1750_v42 = vrot.slane %v1742_v35, %v3019_v39 }
 0x58d   : > { %v1760_v43 = vcombine.low %v1741_v38, %v1757_v40  ;;  %v1759_v44 = vcombine.high %v1734_v41, %v1750_v42  ;;  %v1761_v36 = vcombine.high %v1741_v38, %v1757_v40  ;;  %v1758_v37 = vcombine.low %v1734_v41, %v1750_v42 }
 0x58f   : > { %1767 = vrot.lane.b32.xlu1 %v1760_v43, %s2609_s21  ;;  %1763 = vrot.lane.b32.xlu0 %v1759_v44, %s2610_s28 }
 0x593   : > { %1771 = vrot.lane.b32.xlu1 %v1761_v36, %s2611_s14 }
 0x601   : > { %v1768_v32 = vpop.permute.xlu1 %1767  ;;  %v1764_v45 = vpop.permute.xlu0 %1763 }
 0x602   : > { %v1774_v46 = vsel %vm1208_vm2, %v1758_v37, %v1764_v45 }
 0x603   : > { %v1776_v39 = vsel %vm1775_vm4, %v1774_v46, %v1768_v32 }
 0x605   : > { %v1772_v49 = vpop.permute.xlu1 %1771 }
 0x606   : > { %v1778_v50 = vsel %vm1777_vm5, %v1776_v39, %v1772_v49 }
 0x607   : > { %v1779_v51 = vpack.c.bf16 %v1778_v50, %v1778_v50 }
 0x609   : > { %2175 = vmatmul.mubr.msk.bf16.vlgmr.msra.gmra.mrb[20].mxu1 %vm579_vm1, %v1779_v51 }
 0x6dc   : > { %v1840_v53 = vpop.f32.mrb[20].mxu1 }
 0x6dd   : > { %v1841_v54 = vadd.f32 %v2062_v52, %v1840_v53  ;;  %v2176_v55 = vpop.f32.mrb[21].mxu1 }
 0x6de   : > { %v1843_v56 = vpop.f32.mrb[22].mxu1 }
 0x6df   : > { %v2177_v57 = vpop.f32.mrb[23].mxu1  ;;  %1846 = vst.msk [vmem:[%s553_s17] sm:$0xff] %vm579_vm1, %v1841_v54 }
 0x6e0   : > { %2526 = shalt.err (!%p2523_p13)
}
 0x6e1   : > { %s2527_s3 = scalar_lea.hbm %s3166_s20, 128  ;;  %s2531_s28 = scalar_lea.hbm %s3294_s15, 256 }
 0x6e2   : > { %p2528_p3 = scmp.ne.s32.totalorder %s3166_s20, %s2527_s3  ;;  %p2532_p9 = scmp.lt.u32.totalorder %s3166_s20, %s3294_s15 }
 0x6e3   : > { %p2533_p1 = scmp.lt.u32.totalorder %s2531_s28, %s2527_s3  ;;  %p2535_p12 = scmp.lt.u32.totalorder %s2527_s3, %s3166_s20 }
 0x6e4   : > { %p2529_p6 = pnand %p2528_p3, %p3295_p4 }
 0x6e5   : > { %p2534_p10 = por %p2533_p1, %p2532_p9 }
 0x6e6   : > { %p2530_p11 = pneg %p2529_p6 }
 0x6e7   : > { %p2536_p7 = por %p2535_p12, %p2534_p10 }
 0x6e9   : > { %p2537_p2 = pnand %p2536_p7, %p2530_p11 }
 0x6eb   : > { %2540 = shalt.err (!%p2537_p2)
}
 0x6ec   : > { %2200 = dma.vmem_to_hbm [thread:$0]  (%p3295_p4), %s3168_s30, 128, %s3166_s20, %s1848_s27  }
 0x6ed PF: > { %s3296_s26 = sld [smem:[#allocation20_spill]]  ;;  %s3297_s29 = sld [smem:[#allocation25_spill]] }
 0x6ee   : > { %s3298_s13 = sld [smem:[#allocation21_spill]] }
 0x6f3   : > { %s1873_s18 = sand.u32 1, %s3296_s26   ;;  %p3299_p8 = scmp.ne.s32.totalorder %s3297_s29, 0 }
 0x6f4   : > { %p3300_p5 = scmp.ge.s32.totalorder %s3298_s13, 2  ;;  %s1874_s17 = scalar_lea.sflag [#allocation4], %s1873_s18 }
 0x6f6   : > { %p2226_p0 = pnand %p3300_p5, %p3299_p8 }
 0x6f8   : > { %2574 = dma.done.wait (!%p2226_p0), %s1874_s17, 128  }
 0x6f9   : > { %2576 = vsyncadd (!%p2226_p0), %s1874_s17, 4294967168  ;;  %s3301_s24 = sld [smem:[#allocation22_spill]]  ;;  %s3302_s11 = sld [smem:[#allocation23_spill]] }
 0x6fa   : > { %s3303_s21 = smov %s2583_s22  ;;  %s3304_s22 = smov %s2587_s23 }
 0x6ff   : > { %p30_p13 = scmp.ge.s32.totalorder %s3301_s24, 4   ;;  %s3305_s23 = smov %s3302_s11 }
 0x701   :  { %32 = sbr.rel (!%p30_p13) target bundleno = 18 (0x12), region = 153 }
 0x708   :  { %1879 = vsyncpa [#allocation3], 1 }
 0x709   :  { %1881 = vsyncpa [#allocation3 + $0x1], 1 }
 0x70a   :  { %1882 = vsyncpa [#allocation6], 1 }
 0x70b   :  { %1884 = vsyncpa [#allocation6 + $0x1], 1 }
 0x70c   :  { %1885 = vsyncpa [#allocation9], 1 }
 0x70d   :  { %1886 = vsyncpa [#allocation12], 1 }
 0x70e   :  { %1887 = vsyncpa [#allocation4], 1 }
 0x70f   :  { %1889 = vsyncpa [#allocation4 + $0x1], 1 }

</bundles_post_ra>
